<compile_context>
chip_gen: v7x
topology: tpu7x:2x2x1
jax: 0.10.0
libtpu: 0.0.40
codegen_flags: <defaults>
</compile_context>

<pallas_src>
import functools

import jax
import jax.numpy as jnp
from jax.experimental import pallas as pl
from jax.experimental.pallas import tpu as pltpu


def _round_up(a: int, b: int) -> int:
    return (a + b - 1) // b * b


def residual_net_kernel(xt_ref, w1_ref, b1_ref, w2_ref, b2_ref, w3_ref, b3_ref,
                        out_ref, *, test: bool):
    xt = xt_ref[...]                                             # (16, TB)

    # hiddenLayer1 = relu(linearLayer1(x))                        -> (32, TB)
    h1 = jnp.dot(w1_ref[...], xt, preferred_element_type=jnp.float32) + b1_ref[...]
    h1 = jnp.maximum(h1, 0.0)

    # hiddenLayer2 = relu(linearLayer2(h1))                       -> (32, TB)
    h2 = jnp.dot(w2_ref[...], h1, preferred_element_type=jnp.float32) + b2_ref[...]
    h2 = jnp.maximum(h2, 0.0)

    if test:
        # PyTorch: dropoutLayer2(h2 + h2) with p=0 is the identity -> exact.
        d = h2 + h2
    else:
        # TODO(synk): Dropout(0.1) training-mode stochastic mask not applied
        # (runs as identity); the residual add h2 + h1 itself is exact.
        d = h2 + h1

    # output = linearLayer3(d)                                    -> (5, TB)
    out = jnp.dot(w3_ref[...], d, preferred_element_type=jnp.float32) + b3_ref[...]
    out_ref[...] = out.astype(out_ref.dtype)                      # lane-dense store


def residual_net(x, params, *, test=True, tb=1024):
    """x: (N, 16) float32, any N. Returns (N, 5) float32."""
    w1, b1, w2, b2, w3, b3 = params     # PyTorch layout: w (out, in), b (out, 1)
    n = x.shape[0]

    # Batch tile: multiple of 128 (lane width), clamped so small N uses 1 step.
    tb = max(128, _round_up(min(tb, _round_up(n, 128)), 128))
    n_pad = _round_up(n, tb)

    # Feature-major input: (16, n_pad), batch on the lane axis (zero-padded).
    xt = jnp.transpose(x)
    if n_pad != n:
        xt = jnp.pad(xt, ((0, 0), (0, n_pad - n)))

    kernel = functools.partial(residual_net_kernel, test=test)
    full = lambda a: pl.BlockSpec(a.shape, lambda i: (0,) * a.ndim)  # resident in VMEM

    out_t = pl.pallas_call(
        kernel,
        out_shape=jax.ShapeDtypeStruct((5, n_pad), jnp.float32),
        grid_spec=pltpu.PrefetchScalarGridSpec(
            num_scalar_prefetch=0,
            grid=(n_pad // tb,),
            in_specs=[
                pl.BlockSpec((16, tb), lambda i: (0, i)),   # x^T tile (lane-dense)
                full(w1), full(b1),
                full(w2), full(b2),
                full(w3), full(b3),
            ],
            out_specs=pl.BlockSpec((5, tb), lambda i: (0, i)),   # lane-dense output
        ),
        compiler_params=pltpu.CompilerParams(
            dimension_semantics=("parallel",),
            vmem_limit_bytes=32 * 1024 * 1024,
        ),
    )(xt, w1, b1, w2, b2, w3, b3)

    return jnp.transpose(out_t[:, :n])                      # (N, 5)


def init_params(key):
    """Deterministic init matching nn.Linear, kept in PyTorch (out, in) layout."""
    ks = jax.random.split(key, 6)

    def linear(kw, kb, fan_in, fan_out):
        bound = 1.0 / jnp.sqrt(jnp.float32(fan_in))
        w = jax.random.uniform(kw, (fan_out, fan_in), jnp.float32, -bound, bound)
        b = jax.random.uniform(kb, (fan_out, 1), jnp.float32, -bound, bound)
        return w, b

    w1, b1 = linear(ks[0], ks[1], 16, 32)
    w2, b2 = linear(ks[2], ks[3], 32, 32)
    w3, b3 = linear(ks[4], ks[5], 32, 5)
    return (w1, b1, w2, b2, w3, b3)


def residual_net_ref(x, params, *, test=True):
    """Pure-JAX reference of the PyTorch forward (dropout as identity)."""
    w1, b1, w2, b2, w3, b3 = params
    h1 = jax.nn.relu(x @ w1.T + b1[:, 0])
    h2 = jax.nn.relu(h1 @ w2.T + b2[:, 0])
    d = h2 + h2 if test else h2 + h1
    return d @ w3.T + b3[:, 0]


if __name__ == "__main__":
    key = jax.random.PRNGKey(0)
    kx, kx2, kp = jax.random.split(key, 3)

    params = init_params(kp)

    # Small batch (wrapper pads it up to one 128-wide lane tile).
    x = jax.random.normal(kx, (16, 16), jnp.float32)
    out_test = residual_net(x, params, test=True)
    out_train = residual_net(x, params, test=False)
    jax.block_until_ready(out_test)
    jax.block_until_ready(out_train)

    assert out_test.shape == (16, 5)
    assert jnp.allclose(out_test, residual_net_ref(x, params, test=True),
                        atol=1e-4, rtol=1e-4)
    assert jnp.allclose(out_train, residual_net_ref(x, params, test=False),
                        atol=1e-4, rtol=1e-4)

    # Non-multiple batch + small explicit tile -> exercises padding + multi-step grid.
    x2 = jax.random.normal(kx2, (300, 16), jnp.float32)
    out2 = residual_net(x2, params, test=True, tb=128)
    jax.block_until_ready(out2)
    assert out2.shape == (300, 5)
    assert jnp.allclose(out2, residual_net_ref(x2, params, test=True),
                        atol=1e-4, rtol=1e-4)

    print("KERNEL_OK")
</pallas_src>

<mosaic_0001>
module attributes {stable_mosaic.version = 11 : i64} {
  func.func @residual_net_kernel(%arg0: i32, %arg1: memref<16x128xf32, #tpu.memory_space<vmem>>, %arg2: memref<32x16xf32, #tpu.memory_space<vmem>>, %arg3: memref<32x1xf32, #tpu.memory_space<vmem>>, %arg4: memref<32x32xf32, #tpu.memory_space<vmem>>, %arg5: memref<32x1xf32, #tpu.memory_space<vmem>>, %arg6: memref<5x32xf32, #tpu.memory_space<vmem>>, %arg7: memref<5x1xf32, #tpu.memory_space<vmem>>, %arg8: memref<5x128xf32, #tpu.memory_space<vmem>>) attributes {dimension_semantics = [#tpu.dimension_semantics<parallel>], iteration_bounds = array<i64: 1>, scalar_prefetch = 0 : i64, scratch_operands = 0 : i64, tpu.core_type = #tpu.core_type<tc>, window_params = [{transform_indices = @transform_0, window_bounds = array<i64: 16, 128>}, {pipeline_mode = #tpu.pipeline_mode<synchronous>, transform_indices = @transform_1, window_bounds = array<i64: 32, 16>}, {pipeline_mode = #tpu.pipeline_mode<synchronous>, transform_indices = @transform_2, window_bounds = array<i64: 32, 1>}, {pipeline_mode = #tpu.pipeline_mode<synchronous>, transform_indices = @transform_3, window_bounds = array<i64: 32, 32>}, {pipeline_mode = #tpu.pipeline_mode<synchronous>, transform_indices = @transform_4, window_bounds = array<i64: 32, 1>}, {pipeline_mode = #tpu.pipeline_mode<synchronous>, transform_indices = @transform_5, window_bounds = array<i64: 5, 32>}, {pipeline_mode = #tpu.pipeline_mode<synchronous>, transform_indices = @transform_6, window_bounds = array<i64: 5, 1>}, {transform_indices = @transform_7, window_bounds = array<i64: 5, 128>}]} {
    %c0 = arith.constant 0 : index
    %c0_0 = arith.constant 0 : index
    %0 = vector.load %arg1[%c0, %c0_0] : memref<16x128xf32, #tpu.memory_space<vmem>>, vector<16x128xf32>
    %c0_1 = arith.constant 0 : index
    %c0_2 = arith.constant 0 : index
    %1 = vector.load %arg2[%c0_1, %c0_2] : memref<32x16xf32, #tpu.memory_space<vmem>>, vector<32x16xf32>
    %cst = arith.constant dense<0.000000e+00> : vector<32x128xf32>
    %2 = tpu.matmul %1, %0, %cst {dimension_numbers = #tpu.dot_dimension_numbers<[1], [0], [0], [1], [0, 0, 1, 1], [], []>} : vector<32x16xf32>, vector<16x128xf32>, vector<32x128xf32> -> vector<32x128xf32>
    %c0_3 = arith.constant 0 : index
    %c0_4 = arith.constant 0 : index
    %3 = vector.load %arg3[%c0_3, %c0_4] : memref<32x1xf32, #tpu.memory_space<vmem>>, vector<32x1xf32>
    %4 = vector.broadcast %3 : vector<32x1xf32> to vector<32x128xf32>
    %5 = arith.addf %2, %4 : vector<32x128xf32>
    %cst_5 = arith.constant 0.000000e+00 : f32
    %6 = vector.broadcast %cst_5 : f32 to vector<32x128xf32>
    %7 = arith.maximumf %5, %6 : vector<32x128xf32>
    %c0_6 = arith.constant 0 : index
    %c0_7 = arith.constant 0 : index
    %8 = vector.load %arg4[%c0_6, %c0_7] : memref<32x32xf32, #tpu.memory_space<vmem>>, vector<32x32xf32>
    %cst_8 = arith.constant dense<0.000000e+00> : vector<32x128xf32>
    %9 = tpu.matmul %8, %7, %cst_8 {dimension_numbers = #tpu.dot_dimension_numbers<[1], [0], [0], [1], [0, 0, 1, 1], [], []>} : vector<32x32xf32>, vector<32x128xf32>, vector<32x128xf32> -> vector<32x128xf32>
    %c0_9 = arith.constant 0 : index
    %c0_10 = arith.constant 0 : index
    %10 = vector.load %arg5[%c0_9, %c0_10] : memref<32x1xf32, #tpu.memory_space<vmem>>, vector<32x1xf32>
    %11 = vector.broadcast %10 : vector<32x1xf32> to vector<32x128xf32>
    %12 = arith.addf %9, %11 : vector<32x128xf32>
    %cst_11 = arith.constant 0.000000e+00 : f32
    %13 = vector.broadcast %cst_11 : f32 to vector<32x128xf32>
    %14 = arith.maximumf %12, %13 : vector<32x128xf32>
    %15 = arith.addf %14, %14 : vector<32x128xf32>
    %c0_12 = arith.constant 0 : index
    %c0_13 = arith.constant 0 : index
    %16 = vector.load %arg6[%c0_12, %c0_13] : memref<5x32xf32, #tpu.memory_space<vmem>>, vector<5x32xf32>
    %cst_14 = arith.constant dense<0.000000e+00> : vector<5x128xf32>
    %17 = tpu.matmul %16, %15, %cst_14 {dimension_numbers = #tpu.dot_dimension_numbers<[1], [0], [0], [1], [0, 0, 1, 1], [], []>} : vector<5x32xf32>, vector<32x128xf32>, vector<5x128xf32> -> vector<5x128xf32>
    %c0_15 = arith.constant 0 : index
    %c0_16 = arith.constant 0 : index
    %18 = vector.load %arg7[%c0_15, %c0_16] : memref<5x1xf32, #tpu.memory_space<vmem>>, vector<5x1xf32>
    %19 = vector.broadcast %18 : vector<5x1xf32> to vector<5x128xf32>
    %20 = arith.addf %17, %19 : vector<5x128xf32>
    %c0_17 = arith.constant 0 : index
    %c0_18 = arith.constant 0 : index
    %21 = vector.load %arg8[%c0_17, %c0_18] : memref<5x128xf32, #tpu.memory_space<vmem>>, vector<5x128xf32>
    tpu.vector_store %arg8[%c0_17, %c0_18], %20 {strides = array<i32>} : memref<5x128xf32, #tpu.memory_space<vmem>>, vector<5x128xf32>,
    return
  }
  func.func @transform_0(%arg0: i32) -> (i32, i32) {
    %c0_i32 = arith.constant 0 : i32
    %c0_i32_0 = arith.constant 0 : i32
    return %c0_i32, %arg0 : i32, i32
  }
  func.func @transform_1(%arg0: i32) -> (i32, i32) {
    %c0_i32 = arith.constant 0 : i32
    %c0_i32_0 = arith.constant 0 : i32
    %c0_i32_1 = arith.constant 0 : i32
    return %c0_i32, %c0_i32_0 : i32, i32
  }
  func.func @transform_2(%arg0: i32) -> (i32, i32) {
    %c0_i32 = arith.constant 0 : i32
    %c0_i32_0 = arith.constant 0 : i32
    %c0_i32_1 = arith.constant 0 : i32
    return %c0_i32, %c0_i32_0 : i32, i32
  }
  func.func @transform_3(%arg0: i32) -> (i32, i32) {
    %c0_i32 = arith.constant 0 : i32
    %c0_i32_0 = arith.constant 0 : i32
    %c0_i32_1 = arith.constant 0 : i32
    return %c0_i32, %c0_i32_0 : i32, i32
  }
  func.func @transform_4(%arg0: i32) -> (i32, i32) {
    %c0_i32 = arith.constant 0 : i32
    %c0_i32_0 = arith.constant 0 : i32
    %c0_i32_1 = arith.constant 0 : i32
    return %c0_i32, %c0_i32_0 : i32, i32
  }
  func.func @transform_5(%arg0: i32) -> (i32, i32) {
    %c0_i32 = arith.constant 0 : i32
    %c0_i32_0 = arith.constant 0 : i32
    %c0_i32_1 = arith.constant 0 : i32
    return %c0_i32, %c0_i32_0 : i32, i32
  }
  func.func @transform_6(%arg0: i32) -> (i32, i32) {
    %c0_i32 = arith.constant 0 : i32
    %c0_i32_0 = arith.constant 0 : i32
    %c0_i32_1 = arith.constant 0 : i32
    return %c0_i32, %c0_i32_0 : i32, i32
  }
  func.func @transform_7(%arg0: i32) -> (i32, i32) {
    %c0_i32 = arith.constant 0 : i32
    %c0_i32_0 = arith.constant 0 : i32
    return %c0_i32, %arg0 : i32, i32
  }
}

</mosaic_0001>

<bundles_post_ra>
// kernel: tpu_custom_call.1
= control target key start
LH: loop header
LB: loop body
LE: loop exit
PB: predicated region body
PF: predicated region fallthrough
CT: control target
= control target key end

     0   :  { %vm57_vm0 = vcmask 130048   ;;  %v500_v4 = vmov 0   ;;  %s626_s0 = inlined_call_operand.vmem [shape: f32[16,128], index: 0, kind: input, shape index: {}]   ;;  %s627_s1 = inlined_call_operand.vmem [shape: f32[32,16], index: 1, kind: input, shape index: {}]   ;;  %s628_s2 = inlined_call_operand.vmem [shape: f32[32,1], index: 2, kind: input, shape index: {}]   ;;  %s629_s3 = inlined_call_operand.vmem [shape: f32[32,32], index: 3, kind: input, shape index: {}]   ;;  %s630_s4 = inlined_call_operand.vmem [shape: f32[32,1], index: 4, kind: input, shape index: {}]   ;;  %s631_s5 = inlined_call_operand.vmem [shape: f32[5,32], index: 5, kind: input, shape index: {}]   ;;  %s632_s6 = inlined_call_operand.vmem [shape: f32[5,1], index: 6, kind: input, shape index: {}]   ;;  %s633_s7 = inlined_call_operand.hbm [shape: f32[5,128], index: 7, kind: output, shape index: {}]  }
   0x1   :  { %v27_v0 = vld [vmem:[%s626_s0] sm:$0xff]  ;;  %v28_v1 = vld [vmem:[%s626_s0 + $0x8] sm:$0xff]  ;;  %474 = vset.pattern.permute.xlu0 %v500_v4  ;;  %475 = vset.pattern.permute.xlu1 %v500_v4  ;;  %v35_v6 = vld [vmem:[%s628_s2 + $0x10] sm:$0xff] }
   0x2   :  { %v29_v2 = vld [vmem:[%s627_s1] sm:$0xff]  ;;  %v451_v3 = vpack.c.bf16 %v28_v1, %v27_v0  ;;  %v30_v7 = vld [vmem:[%s627_s1 + $0x8] sm:$0xff]  ;;  %49 = vperm.xlu1 %475, %v35_v6   ;;  %v31_v9 = vld [vmem:[%s627_s1 + $0x10] sm:$0xff] }
   0x3   :  { %420 = vmatprep.mubr.msk.f32.mxu0 %vm57_vm0, %v29_v2  ;;  %v33_v5 = vld [vmem:[%s628_s2] sm:$0xff]  ;;  %v34_v8 = vld [vmem:[%s628_s2 + $0x8] sm:$0xff]  ;;  %v36_v10 = vld [vmem:[%s628_s2 + $0x18] sm:$0xff] }
   0x4   :  { %452 = vmatprep.subr.bf16.mxu0 %v451_v3  ;;  %39 = vperm.xlu0 %474, %v33_v5  }
   0x5   :  { %454 = vmatpush3.bf16.msra.mxu0 %v451_v3 }
   0x6   :  { %12 = vsyncpa [#allocation3], 0  ;;  %v32_v11 = vld [vmem:[%s627_s1 + $0x18] sm:$0xff]  ;;  %v163_v12 = vld [vmem:[%s630_s4] sm:$0xff]  ;;  %54 = vperm.xlu1 %475, %v36_v10   ;;  %vm187_vm1 = vcmask 261120   ;;  %v501_v39 = vmov 0.0|0.0  }
   0x7   :  { %v164_v13 = vld [vmem:[%s630_s4 + $0x8] sm:$0xff]  ;;  %v165_v14 = vld [vmem:[%s630_s4 + $0x10] sm:$0xff]  ;;  %v166_v15 = vld [vmem:[%s630_s4 + $0x18] sm:$0xff]  ;;  %463 = vmatprep.subr.bf16.mxu0 %v501_v39  ;;  %vm502_vm2 = vmmov 0   ;;  %v503_v40 = vmov 0.0   ;;  %s504_s11 = smov [#allocation2]  }
   0x8   :  { %421 = vmatmul.mubr.msk.f32.vlgmr.msra.gmra.mrb[0].mxu0 %vm57_vm0, %v30_v7  ;;  %44 = vperm.xlu0 %474, %v34_v8   ;;  %v294_v16 = vld [vmem:[%s632_s6] sm:$0x1f]  ;;  %v160_v36 = vld [vmem:[%s629_s3 + $0x8] sm:$0xff]  ;;  %v161_v37 = vld [vmem:[%s629_s3 + $0x10] sm:$0xff]  ;;  %s380_s12 = sshll.u32 %s504_s11, 4  ;;  %s381_s12 = int_to_ptr.vmem [resolvable:$true] %s380_s12 }
   0x9   :  { %423 = vmatprep.mubr.msk.f32.mxu0 %vm57_vm0, %v31_v9  ;;  %v159_v17 = vld [vmem:[%s629_s3] sm:$0xff]  ;;  %v162_v38 = vld [vmem:[%s629_s3 + $0x18] sm:$0xff]  ;;  %s476_s13 = scalar_lea.vmem %s381_s12, 128  ;;  %p481_p1 = scmp.lt.s32.totalorder %s381_s12, %s381_s12 }
   0xa   :  { %174 = vperm.xlu1 %475, %v164_v13   ;;  %434 = vmatprep.mubr.msk.f32.mxu1 %vm187_vm1, %v159_v17  ;;  %v293_v63 = vld [vmem:[%s631_s5] sm:$0x1f]  ;;  %p477_p0 = scmp.ne.s32.totalorder %s381_s12, %s476_s13  ;;  %p482_p2 = scmp.lt.s32.totalorder %s476_s13, %s476_s13 }
   0xc   :  { %424 = vmatmul.mubr.msk.f32.gmra.mrb[2].mxu0 %vm57_vm0, %v32_v11  ;;  %169 = vperm.xlu0 %474, %v163_v12   ;;  %p483_p3 = por %p482_p2, %p481_p1 }
   0xd   :  { %448 = vmatprep.mubr.msk.f32.mxu0 %vm502_vm2, %v503_v40 }
   0xe   :  { %184 = vperm.xlu1 %475, %v166_v15   ;;  %p484_p4 = pnand %p483_p3, %p477_p0 }
  0x10   :  { %179 = vperm.xlu0 %474, %v165_v14  }
  0x14   :  { %297 = vperm.xlu0 %474, %v294_v16  }
  0x81   :  { %v50_v19 = vpop.permute.xlu1 %49 }
  0x83   :  { %v40_v18 = vpop.permute.xlu0 %39 }
  0x85   :  { %v55_v26 = vpop.permute.xlu1 %54 }
  0x87   :  { %v45_v20 = vpop.permute.xlu0 %44 }
  0x89   :  { %v175_v41 = vpop.permute.xlu1 %174 }
  0x8b   :  { %v170_v42 = vpop.permute.xlu0 %169 }
  0x8d   :  { %v185_v48 = vpop.permute.xlu1 %184 }
  0x8f   :  { %v180_v51 = vpop.permute.xlu0 %179 }
  0x93   :  { %v298_v0 = vpop.permute.xlu0 %297 }
  0xdb   :  { %v422_v21 = vpop.f32.mrb[0].mxu0 }
  0xdc   :  { %v142_v22 = vadd.f32 %v422_v21, %v45_v20  ;;  %v136_v23 = vpop.f32.mrb[1].mxu0 }
  0xdd   :  { %v137_v24 = vadd.f32 %v136_v23, %v40_v18 }
  0xde   :  { %v156_v25 = vmax.f32 %v142_v22, 0.0 }
  0xdf   :  { %v155_v27 = vmax.f32 %v137_v24, 0.0  ;;  %v425_v28 = vpop.f32.mrb[2].mxu0 }
  0xe0   :  { %v152_v29 = vadd.f32 %v425_v28, %v55_v26  ;;  %v146_v30 = vpop.f32.mrb[3].mxu0 }
  0xe1   :  { %v147_v31 = vadd.f32 %v146_v30, %v50_v19  ;;  %v455_v32 = vpack.c.bf16 %v156_v25, %v155_v27 }
  0xe2   :  { %v158_v33 = vmax.f32 %v152_v29, 0.0 }
  0xe3   :  { %v157_v34 = vmax.f32 %v147_v31, 0.0  ;;  %456 = vmatprep.subr.bf16.mxu1 %v455_v32 }
  0xe4   :  { %458 = vmatpush3.bf16.msra.mxu1 %v455_v32 }
  0xe5   :  { %v459_v35 = vpack.c.bf16 %v158_v33, %v157_v34 }
  0xe7   :  { %460 = vmatprep.subr.bf16.mxu1 %v459_v35 }
  0xe8   :  { %462 = vmatpush3.bf16.msra.mxu1 %v459_v35 }
  0xeb   :  { %435 = vmatmul.mubr.msk.f32.vlgmr.msra.gmra.mrb[0].mxu1 %vm187_vm1, %v160_v36 }
  0xec   :  { %437 = vmatprep.mubr.msk.f32.mxu1 %vm187_vm1, %v161_v37 }
  0xef   :  { %438 = vmatmul.mubr.msk.f32.gmra.mrb[2].mxu1 %vm187_vm1, %v162_v38 }
 0x1be   :  { %v436_v43 = vpop.f32.mrb[0].mxu1 }
 0x1bf   :  { %v272_v44 = vadd.f32 %v436_v43, %v175_v41  ;;  %v266_v45 = vpop.f32.mrb[1].mxu1 }
 0x1c0   :  { %v267_v46 = vadd.f32 %v266_v45, %v170_v42 }
 0x1c1   :  { %v286_v47 = vmax.f32 %v272_v44, 0.0 }
 0x1c2   :  { %v285_v49 = vmax.f32 %v267_v46, 0.0  ;;  %v439_v50 = vpop.f32.mrb[2].mxu1 }
 0x1c3   :  { %v290_v52 = vadd.f32 %v286_v47, %v286_v47  ;;  %v282_v53 = vadd.f32 %v439_v50, %v185_v48  ;;  %v276_v54 = vpop.f32.mrb[3].mxu1 }
 0x1c4   :  { %v289_v55 = vadd.f32 %v285_v49, %v285_v49  ;;  %v277_v56 = vadd.f32 %v276_v54, %v180_v51 }
 0x1c5   :  { %v288_v57 = vmax.f32 %v282_v53, 0.0 }
 0x1c6   :  { %v464_v58 = vpack.c.bf16 %v290_v52, %v289_v55  ;;  %v287_v59 = vmax.f32 %v277_v56, 0.0 }
 0x1c7   :  { %v292_v60 = vadd.f32 %v288_v57, %v288_v57 }
 0x1c8   :  { %v291_v61 = vadd.f32 %v287_v59, %v287_v59  ;;  %465 = vmatpush3.bf16.msra.mxu0 %v464_v58 }
 0x1c9   :  { %466 = vmatprep.subr.bf16.mxu0 %v501_v39 }
 0x1ca   :  { %v467_v62 = vpack.c.bf16 %v292_v60, %v291_v61 }
 0x1cc   :  { %468 = vmatpush3.bf16.msra.mxu0 %v467_v62 }
 0x1cf   :  { %449 = vmatmul.mubr.msk.f32.vlgmr.msra.gmra.mrb[4].mxu0 %vm187_vm1, %v293_v63 }
 0x2a2   :  { %v369_v1 = vpop.f32.mrb[4].mxu0 }
 0x2a3   :  { %v370_v2 = vadd.f32 %v369_v1, %v298_v0  ;;  %v450_v3 = vpop.f32.mrb[5].mxu0 }
 0x2a5   :  { %373 = vst [vmem:[#allocation2] sm:$0x1f] %v370_v2 }
 0x2a6   :  { %487 = shalt.err (!%p484_p4)
}
 0x2a7   :  { %s488_s5 = scalar_lea.hbm %s633_s7, 128 }
 0x2a8   :  { %p489_p5 = scmp.ne.s32.totalorder %s633_s7, %s488_s5  ;;  %p492_p6 = scmp.lt.u32.totalorder %s488_s5, %s633_s7 }
 0x2aa   :  { %p494_p7 = pnand %p492_p6, %p489_p5 }
 0x2ac   :  { %497 = shalt.err (!%p494_p7)
}
 0x2ad   :  { %383 = dma.vmem_to_hbm [thread:$0]  %s381_s12, 128, %s633_s7, [#allocation3]  }
 0x2ae   :  { %498 = dma.done.wait [#allocation3], 128  }
 0x2af   :  { %499 = vsyncadd [#allocation3], 4294967168 }
 0x2b0   :  { %387 = vsyncpa [#allocation3], 1 }

</bundles_post_ra>
